<compile_context>
chip_gen: v5e
topology: v5e:2x2
jax: 0.10.0
libtpu: 0.0.40
codegen_flags: <defaults>
</compile_context>

<pallas_src>
import functools

import jax
import jax.numpy as jnp
from jax.experimental import pallas as pl
from jax.experimental.pallas import tpu as pltpu


def _cross_attn_kernel(hid_ref, kv_ref, lnw_ref, wq_ref, wk_ref, wv_ref,
                       wo_ref, out_ref, normed_ref, k_scr, v_scr,
                       *, eps, cache_kv):
    """Grid = (B, n_q_tiles, n_heads); one head of one query tile per step."""
    qi = pl.program_id(1)
    h = pl.program_id(2)

    # ---- T5LayerNorm (RMS, no mean sub), once per (b, q-tile), in f32 ----
    @pl.when(h == 0)
    def _():
        hid = hid_ref[...]                                       # (tq, D) f32
        var = jnp.mean(hid * hid, axis=-1, keepdims=True)        # (tq, 1)
        normed = hid * jax.lax.rsqrt(var + eps) * lnw_ref[...]   # (tq, D)
        normed_ref[...] = normed.astype(jnp.bfloat16)
        # Initialize the resident f32 output block with the residual.
        out_ref[...] = hid

    # ---- K/V per-head projections, cached across query tiles ----
    def _project_kv():
        kv_bf = kv_ref[...]                                      # (Lk, D) bf16
        k_scr[h] = jnp.dot(kv_bf, wk_ref[...],
                           preferred_element_type=jnp.float32
                           ).astype(jnp.bfloat16)                # (Lk, dk)
        v_scr[h] = jnp.dot(kv_bf, wv_ref[...],
                           preferred_element_type=jnp.float32
                           ).astype(jnp.bfloat16)                # (Lk, dk)

    if cache_kv:
        @pl.when(qi == 0)
        def _():
            _project_kv()
    else:
        _project_kv()

    normed_bf = normed_ref[...]                                  # (tq, D) bf16
    k_h = k_scr[h]                                               # (Lk, dk) bf16
    v_h = v_scr[h]                                               # (Lk, dk) bf16

    # ---- Per-head query projection (bf16 operands, f32 accumulation) ----
    q_h = jnp.dot(normed_bf, wq_ref[...],
                  preferred_element_type=jnp.float32)            # (tq, dk)

    # ---- Attention scores without materializing k^T (NT matmul) ----
    scores = jax.lax.dot_general(
        q_h.astype(jnp.bfloat16), k_h,
        dimension_numbers=(((1,), (1,)), ((), ())),
        preferred_element_type=jnp.float32)                      # (tq, Lk)

    # ---- Softmax in f32 (position_bias == 0; T5 has no 1/sqrt(dk) scaling) --
    scores = scores - jnp.max(scores, axis=-1, keepdims=True)
    p = jnp.exp(scores)
    attn = p * pl.reciprocal(jnp.sum(p, axis=-1, keepdims=True), approx=True)

    # ---- Context, per-head output projection, accumulate into out block ----
    ctx = jnp.dot(attn.astype(jnp.bfloat16), v_h,
                  preferred_element_type=jnp.float32)            # (tq, dk)
    out_ref[...] += jnp.dot(ctx.astype(jnp.bfloat16), wo_ref[...],
                            preferred_element_type=jnp.float32)  # (tq, D)


def _choose_q_tile(lq):
    for t in (512, 256, 128, 64, 32, 16, 8):
        if lq % t == 0:
            return t
    return lq


def t5_layer_cross_attention(hidden_states, key_value_states, ln_weight,
                             wq, wk, wv, wo, *, n_heads, d_kv, eps=1e-6,
                             q_tile=None):
    B, Lq, D = hidden_states.shape
    _, Lk, _ = key_value_states.shape
    inner = n_heads * d_kv
    assert wq.shape == (D, inner) and wk.shape == (D, inner)
    assert wv.shape == (D, inner) and wo.shape == (inner, D)

    tq = q_tile if q_tile is not None else _choose_q_tile(Lq)
    assert Lq % tq == 0
    nq = Lq // tq

    # Cache K/V projections across q tiles (scratch carry along the qi axis)
    # only when it cannot collide with megacore sharding of that axis:
    #   nq == 1 : trivially safe (nothing carried)
    #   B  >  1 : the batch axis already supplies core parallelism; mark qi
    #             "arbitrary" so the carried scratch stays on one core.
    cache_kv = (nq == 1) or (B > 1)
    qi_sem = "arbitrary" if (cache_kv and nq > 1) else "parallel"

    # Head-split weights (one (D, dk) / (dk, D) slab per head), bf16 for MXU.
    wq_h = wq.reshape(D, n_heads, d_kv).transpose(1, 0, 2).astype(jnp.bfloat16)
    wk_h = wk.reshape(D, n_heads, d_kv).transpose(1, 0, 2).astype(jnp.bfloat16)
    wv_h = wv.reshape(D, n_heads, d_kv).transpose(1, 0, 2).astype(jnp.bfloat16)
    wo_h = wo.reshape(n_heads, d_kv, D).astype(jnp.bfloat16)
    kv_bf = key_value_states.astype(jnp.bfloat16)
    hid_f32 = hidden_states.astype(jnp.float32)
    ln_w = ln_weight.reshape(1, D).astype(jnp.float32)

    # Rough double-buffered working-set estimate; only raise the scoped VMEM
    # limit above the default when large tiles actually need it (v7x-safe cap).
    est = (2 * (tq * D * 4 + Lk * D * 2 + D * 4
                + 3 * D * d_kv * 2 + d_kv * D * 2 + tq * D * 4)
           + tq * D * 2 + 2 * n_heads * Lk * d_kv * 2)
    cp_kwargs = dict(dimension_semantics=("parallel", qi_sem, "arbitrary"))
    if est > 24 * 1024 * 1024:
        cp_kwargs["vmem_limit_bytes"] = min(int(est * 2), 60 * 1024 * 1024)

    kernel = functools.partial(_cross_attn_kernel, eps=eps, cache_kv=cache_kv)

    layer_output = pl.pallas_call(
        kernel,
        out_shape=jax.ShapeDtypeStruct((B, Lq, D), jnp.float32),
        grid_spec=pltpu.PrefetchScalarGridSpec(
            num_scalar_prefetch=0,
            grid=(B, nq, n_heads),
            in_specs=[
                # hidden: one query tile, invariant over heads
                pl.BlockSpec((None, tq, D), lambda b, qi, h: (b, qi, 0)),
                # key/value states: full Lk, invariant over q tiles and heads
                pl.BlockSpec((None, Lk, D), lambda b, qi, h: (b, 0, 0)),
                # layer-norm weight (constant block)
                pl.BlockSpec((1, D), lambda b, qi, h: (0, 0)),
                # per-head weight slabs, selected by the head grid axis
                pl.BlockSpec((None, D, d_kv), lambda b, qi, h: (h, 0, 0)),
                pl.BlockSpec((None, D, d_kv), lambda b, qi, h: (h, 0, 0)),
                pl.BlockSpec((None, D, d_kv), lambda b, qi, h: (h, 0, 0)),
                pl.BlockSpec((None, d_kv, D), lambda b, qi, h: (h, 0, 0)),
            ],
            # output block is resident across the head (reduction) axis
            out_specs=pl.BlockSpec((None, tq, D), lambda b, qi, h: (b, qi, 0)),
            scratch_shapes=[
                pltpu.VMEM((tq, D), jnp.bfloat16),               # normed hidden
                pltpu.VMEM((n_heads, Lk, d_kv), jnp.bfloat16),   # K per head
                pltpu.VMEM((n_heads, Lk, d_kv), jnp.bfloat16),   # V per head
            ],
        ),
        compiler_params=pltpu.CompilerParams(**cp_kwargs),
    )(hid_f32, kv_bf, ln_w, wq_h, wk_h, wv_h, wo_h)

    # position_bias: has_relative_attention_bias=False, mask=None -> zeros.
    # TODO(synk): drop this dense zeros tensor at call sites that never read it
    # (pure HBM-write overhead for large H*Lq*Lk).
    position_bias = jnp.zeros((1, n_heads, Lq, Lk), dtype=jnp.float32)
    return layer_output, position_bias


if __name__ == "__main__":
    # Small T5-like config
    B, Lq, Lk = 2, 16, 16
    d_model, n_heads, d_kv = 32, 4, 8
    inner = n_heads * d_kv

    key = jax.random.PRNGKey(0)
    k_hid, k_kv, k_q, k_k, k_v, k_o, k_ln = jax.random.split(key, 7)

    hidden_states = jax.random.normal(k_hid, (B, Lq, d_model), jnp.float32)
    key_value_states = jax.random.normal(k_kv, (B, Lk, d_model), jnp.float32)

    scale = 1.0 / jnp.sqrt(jnp.float32(d_model))
    wq = jax.random.normal(k_q, (d_model, inner), jnp.float32) * scale
    wk = jax.random.normal(k_k, (d_model, inner), jnp.float32) * scale
    wv = jax.random.normal(k_v, (d_model, inner), jnp.float32) * scale
    wo = jax.random.normal(k_o, (inner, d_model), jnp.float32) * scale
    ln_weight = jnp.ones((d_model,), jnp.float32)  # T5LayerNorm init = ones

    # ---- pure-JAX f32 reference ----
    def ref_fwd(hid, kv):
        var = jnp.mean(hid * hid, axis=-1, keepdims=True)
        normed = hid * jax.lax.rsqrt(var + 1e-6) * ln_weight
        q = normed @ wq
        k = kv @ wk
        v = kv @ wv
        q = q.reshape(B, Lq, n_heads, d_kv).transpose(0, 2, 1, 3)
        k = k.reshape(B, Lk, n_heads, d_kv).transpose(0, 2, 1, 3)
        v = v.reshape(B, Lk, n_heads, d_kv).transpose(0, 2, 1, 3)
        scores = jnp.einsum('bhqd,bhkd->bhqk', q, k)
        attn = jax.nn.softmax(scores, axis=-1)
        ctx = jnp.einsum('bhqk,bhkd->bhqd', attn, v)
        ctx = ctx.transpose(0, 2, 1, 3).reshape(B, Lq, inner)
        return hid + ctx @ wo

    ref = ref_fwd(hidden_states, key_value_states)

    # Run twice: default tiling (single q tile) and forced multi-tile q axis
    # (nq=2) to exercise the K/V-cache-across-q-tiles path.
    for qt in (None, 8):
        layer_out, pos_bias = t5_layer_cross_attention(
            hidden_states, key_value_states, ln_weight, wq, wk, wv, wo,
            n_heads=n_heads, d_kv=d_kv, eps=1e-6, q_tile=qt)
        jax.block_until_ready(layer_out)
        jax.block_until_ready(pos_bias)

        # bf16 MXU operands + approx reciprocal -> loosened tolerance vs f32.
        max_err = float(jnp.max(jnp.abs(layer_out - ref)))
        assert jnp.allclose(layer_out, ref, atol=5e-2, rtol=5e-2), (qt, max_err)
        assert pos_bias.shape == (1, n_heads, Lq, Lk)

    print("KERNEL_OK")
</pallas_src>

<mosaic_0001>
module attributes {stable_mosaic.version = 11 : i64} {
  func.func @_cross_attn_kernel(%arg0: i32, %arg1: i32, %arg2: i32, %arg3: memref<1x16x32xf32, #tpu.memory_space<vmem>>, %arg4: memref<1x16x32xbf16, #tpu.memory_space<vmem>>, %arg5: memref<1x32xf32, #tpu.memory_space<vmem>>, %arg6: memref<1x32x8xbf16, #tpu.memory_space<vmem>>, %arg7: memref<1x32x8xbf16, #tpu.memory_space<vmem>>, %arg8: memref<1x32x8xbf16, #tpu.memory_space<vmem>>, %arg9: memref<1x8x32xbf16, #tpu.memory_space<vmem>>, %arg10: memref<1x16x32xf32, #tpu.memory_space<vmem>>, %arg11: memref<16x32xbf16, #tpu.memory_space<vmem>>, %arg12: memref<4x16x8xbf16, #tpu.memory_space<vmem>>, %arg13: memref<4x16x8xbf16, #tpu.memory_space<vmem>>) attributes {dimension_semantics = [#tpu.dimension_semantics<parallel>, #tpu.dimension_semantics<parallel>, #tpu.dimension_semantics<arbitrary>], iteration_bounds = array<i64: 2, 1, 4>, scalar_prefetch = 0 : i64, scratch_operands = 3 : i64, tpu.core_type = #tpu.core_type<tc>, window_params = [{transform_indices = @transform_0, window_bounds = array<i64: 1, 16, 32>}, {transform_indices = @transform_1, window_bounds = array<i64: 1, 16, 32>}, {pipeline_mode = #tpu.pipeline_mode<synchronous>, transform_indices = @transform_2, window_bounds = array<i64: 1, 32>}, {transform_indices = @transform_3, window_bounds = array<i64: 1, 32, 8>}, {transform_indices = @transform_4, window_bounds = array<i64: 1, 32, 8>}, {transform_indices = @transform_5, window_bounds = array<i64: 1, 32, 8>}, {transform_indices = @transform_6, window_bounds = array<i64: 1, 8, 32>}, {transform_indices = @transform_7, window_bounds = array<i64: 1, 16, 32>}]} {
    %c0_i32 = arith.constant 0 : i32
    %0 = arith.cmpi eq, %arg2, %c0_i32 : i32
    %1 = arith.extui %0 : i1 to i32
    %c0_i32_0 = arith.constant 0 : i32
    %2 = arith.cmpi ne, %1, %c0_i32_0 : i32
    scf.if %2 {
      %c0_25 = arith.constant 0 : index
      %c0_26 = arith.constant 0 : index
      %c0_27 = arith.constant 0 : index
      %40 = vector.load %arg3[%c0_25, %c0_26, %c0_27] : memref<1x16x32xf32, #tpu.memory_space<vmem>>, vector<1x16x32xf32>
      %41 = vector.shape_cast %40 : vector<1x16x32xf32> to vector<16x32xf32>
      %42 = arith.mulf %41, %41 : vector<16x32xf32>
      %cst_28 = arith.constant dense<0.000000e+00> : vector<16xf32>
      %43 = vector.multi_reduction <add>, %42, %cst_28 [1] : vector<16x32xf32> to vector<16xf32>
      %44 = vector.shape_cast %43 : vector<16xf32> to vector<16x1xf32>
      %cst_29 = arith.constant 3.200000e+01 : f32
      %45 = vector.broadcast %cst_29 : f32 to vector<16x1xf32>
      %46 = arith.divf %44, %45 : vector<16x1xf32>
      %cst_30 = arith.constant 9.99999997E-7 : f32
      %47 = vector.broadcast %cst_30 : f32 to vector<16x1xf32>
      %48 = arith.addf %46, %47 : vector<16x1xf32>
      %49 = math.rsqrt %48 : vector<16x1xf32>
      %50 = vector.broadcast %49 : vector<16x1xf32> to vector<16x32xf32>
      %51 = arith.mulf %41, %50 : vector<16x32xf32>
      %c0_31 = arith.constant 0 : index
      %c0_32 = arith.constant 0 : index
      %52 = vector.load %arg5[%c0_31, %c0_32] : memref<1x32xf32, #tpu.memory_space<vmem>>, vector<1x32xf32>
      %53 = vector.broadcast %52 : vector<1x32xf32> to vector<16x32xf32>
      %54 = arith.mulf %51, %53 : vector<16x32xf32>
      %55 = arith.truncf %54 : vector<16x32xf32> to vector<16x32xbf16>
      %c0_33 = arith.constant 0 : index
      %c0_34 = arith.constant 0 : index
      %56 = vector.load %arg11[%c0_33, %c0_34] : memref<16x32xbf16, #tpu.memory_space<vmem>>, vector<16x32xbf16>
      tpu.vector_store %arg11[%c0_33, %c0_34], %55 {strides = array<i32>} : memref<16x32xbf16, #tpu.memory_space<vmem>>, vector<16x32xbf16>,
      %c0_35 = arith.constant 0 : index
      %c0_36 = arith.constant 0 : index
      %c0_37 = arith.constant 0 : index
      %57 = vector.load %arg10[%c0_35, %c0_36, %c0_37] : memref<1x16x32xf32, #tpu.memory_space<vmem>>, vector<1x16x32xf32>
      %58 = vector.shape_cast %57 : vector<1x16x32xf32> to vector<16x32xf32>
      %59 = vector.shape_cast %41 : vector<16x32xf32> to vector<1x16x32xf32>
      tpu.vector_store %arg10[%c0_35, %c0_36, %c0_37], %59 {strides = array<i32>} : memref<1x16x32xf32, #tpu.memory_space<vmem>>, vector<1x16x32xf32>,
    } else {
    }
    %c0_i32_1 = arith.constant 0 : i32
    %3 = arith.cmpi eq, %arg1, %c0_i32_1 : i32
    %4 = arith.extui %3 : i1 to i32
    %c0_i32_2 = arith.constant 0 : i32
    %5 = arith.cmpi ne, %4, %c0_i32_2 : i32
    scf.if %5 {
      %c0_25 = arith.constant 0 : index
      %c0_26 = arith.constant 0 : index
      %c0_27 = arith.constant 0 : index
      %40 = vector.load %arg4[%c0_25, %c0_26, %c0_27] : memref<1x16x32xbf16, #tpu.memory_space<vmem>>, vector<1x16x32xbf16>
      %41 = vector.shape_cast %40 : vector<1x16x32xbf16> to vector<16x32xbf16>
      %c0_28 = arith.constant 0 : index
      %c0_29 = arith.constant 0 : index
      %c0_30 = arith.constant 0 : index
      %42 = vector.load %arg7[%c0_28, %c0_29, %c0_30] : memref<1x32x8xbf16, #tpu.memory_space<vmem>>, vector<1x32x8xbf16>
      %43 = vector.shape_cast %42 : vector<1x32x8xbf16> to vector<32x8xbf16>
      %cst_31 = arith.constant dense<0.000000e+00> : vector<16x8xf32>
      %44 = tpu.matmul %41, %43, %cst_31 {dimension_numbers = #tpu.dot_dimension_numbers<[1], [0], [0], [1], [0, 0, 1, 1], [], []>} : vector<16x32xbf16>, vector<32x8xbf16>, vector<16x8xf32> -> vector<16x8xf32>
      %45 = arith.truncf %44 : vector<16x8xf32> to vector<16x8xbf16>
      %46 = arith.index_cast %arg2 : i32 to index
      %c0_32 = arith.constant 0 : index
      %c0_33 = arith.constant 0 : index
      %47 = vector.load %arg12[%46, %c0_32, %c0_33] : memref<4x16x8xbf16, #tpu.memory_space<vmem>>, vector<1x16x8xbf16>
      %48 = vector.shape_cast %47 : vector<1x16x8xbf16> to vector<16x8xbf16>
      %49 = vector.shape_cast %45 : vector<16x8xbf16> to vector<1x16x8xbf16>
      tpu.vector_store %arg12[%46, %c0_32, %c0_33], %49 {strides = array<i32>} : memref<4x16x8xbf16, #tpu.memory_space<vmem>>, vector<1x16x8xbf16>,
      %c0_34 = arith.constant 0 : index
      %c0_35 = arith.constant 0 : index
      %c0_36 = arith.constant 0 : index
      %50 = vector.load %arg8[%c0_34, %c0_35, %c0_36] : memref<1x32x8xbf16, #tpu.memory_space<vmem>>, vector<1x32x8xbf16>
      %51 = vector.shape_cast %50 : vector<1x32x8xbf16> to vector<32x8xbf16>
      %cst_37 = arith.constant dense<0.000000e+00> : vector<16x8xf32>
      %52 = tpu.matmul %41, %51, %cst_37 {dimension_numbers = #tpu.dot_dimension_numbers<[1], [0], [0], [1], [0, 0, 1, 1], [], []>} : vector<16x32xbf16>, vector<32x8xbf16>, vector<16x8xf32> -> vector<16x8xf32>
      %53 = arith.truncf %52 : vector<16x8xf32> to vector<16x8xbf16>
      %54 = arith.index_cast %arg2 : i32 to index
      %c0_38 = arith.constant 0 : index
      %c0_39 = arith.constant 0 : index
      %55 = vector.load %arg13[%54, %c0_38, %c0_39] : memref<4x16x8xbf16, #tpu.memory_space<vmem>>, vector<1x16x8xbf16>
      %56 = vector.shape_cast %55 : vector<1x16x8xbf16> to vector<16x8xbf16>
      %57 = vector.shape_cast %53 : vector<16x8xbf16> to vector<1x16x8xbf16>
      tpu.vector_store %arg13[%54, %c0_38, %c0_39], %57 {strides = array<i32>} : memref<4x16x8xbf16, #tpu.memory_space<vmem>>, vector<1x16x8xbf16>,
    } else {
    }
    %c0 = arith.constant 0 : index
    %c0_3 = arith.constant 0 : index
    %6 = vector.load %arg11[%c0, %c0_3] : memref<16x32xbf16, #tpu.memory_space<vmem>>, vector<16x32xbf16>
    %7 = arith.index_cast %arg2 : i32 to index
    %c0_4 = arith.constant 0 : index
    %c0_5 = arith.constant 0 : index
    %8 = vector.load %arg12[%7, %c0_4, %c0_5] : memref<4x16x8xbf16, #tpu.memory_space<vmem>>, vector<1x16x8xbf16>
    %9 = vector.shape_cast %8 : vector<1x16x8xbf16> to vector<16x8xbf16>
    %10 = arith.index_cast %arg2 : i32 to index
    %c0_6 = arith.constant 0 : index
    %c0_7 = arith.constant 0 : index
    %11 = vector.load %arg13[%10, %c0_6, %c0_7] : memref<4x16x8xbf16, #tpu.memory_space<vmem>>, vector<1x16x8xbf16>
    %12 = vector.shape_cast %11 : vector<1x16x8xbf16> to vector<16x8xbf16>
    %c0_8 = arith.constant 0 : index
    %c0_9 = arith.constant 0 : index
    %c0_10 = arith.constant 0 : index
    %13 = vector.load %arg6[%c0_8, %c0_9, %c0_10] : memref<1x32x8xbf16, #tpu.memory_space<vmem>>, vector<1x32x8xbf16>
    %14 = vector.shape_cast %13 : vector<1x32x8xbf16> to vector<32x8xbf16>
    %cst = arith.constant dense<0.000000e+00> : vector<16x8xf32>
    %15 = tpu.matmul %6, %14, %cst {dimension_numbers = #tpu.dot_dimension_numbers<[1], [0], [0], [1], [0, 0, 1, 1], [], []>} : vector<16x32xbf16>, vector<32x8xbf16>, vector<16x8xf32> -> vector<16x8xf32>
    %16 = arith.truncf %15 : vector<16x8xf32> to vector<16x8xbf16>
    %cst_11 = arith.constant dense<0.000000e+00> : vector<16x16xf32>
    %17 = tpu.matmul %16, %9, %cst_11 {dimension_numbers = #tpu.dot_dimension_numbers<[1], [1], [0], [0], [0, 0, 1, 0], [], []>} : vector<16x8xbf16>, vector<16x8xbf16>, vector<16x16xf32> -> vector<16x16xf32>
    %cst_12 = arith.constant dense<0xFF800000> : vector<16xf32>
    %18 = vector.multi_reduction <maximumf>, %17, %cst_12 [1] : vector<16x16xf32> to vector<16xf32>
    %19 = vector.shape_cast %18 : vector<16xf32> to vector<16x1xf32>
    %20 = vector.broadcast %19 : vector<16x1xf32> to vector<16x16xf32>
    %21 = arith.subf %17, %20 : vector<16x16xf32>
    %22 = math.exp %21 : vector<16x16xf32>
    %cst_13 = arith.constant dense<0.000000e+00> : vector<16xf32>
    %23 = vector.multi_reduction <add>, %22, %cst_13 [1] : vector<16x16xf32> to vector<16xf32>
    %24 = vector.shape_cast %23 : vector<16xf32> to vector<16x1xf32>
    %25 = tpu.reciprocal %24 {approx = true} : vector<16x1xf32> -> vector<16x1xf32>
    %26 = vector.broadcast %25 : vector<16x1xf32> to vector<16x16xf32>
    %27 = arith.mulf %22, %26 : vector<16x16xf32>
    %28 = arith.truncf %27 : vector<16x16xf32> to vector<16x16xbf16>
    %cst_14 = arith.constant dense<0.000000e+00> : vector<16x8xf32>
    %29 = tpu.matmul %28, %12, %cst_14 {dimension_numbers = #tpu.dot_dimension_numbers<[1], [0], [0], [1], [0, 0, 1, 1], [], []>} : vector<16x16xbf16>, vector<16x8xbf16>, vector<16x8xf32> -> vector<16x8xf32>
    %c0_15 = arith.constant 0 : index
    %c0_16 = arith.constant 0 : index
    %c0_17 = arith.constant 0 : index
    %30 = vector.load %arg10[%c0_15, %c0_16, %c0_17] : memref<1x16x32xf32, #tpu.memory_space<vmem>>, vector<1x16x32xf32>
    %31 = vector.shape_cast %30 : vector<1x16x32xf32> to vector<16x32xf32>
    %32 = arith.truncf %29 : vector<16x8xf32> to vector<16x8xbf16>
    %c0_18 = arith.constant 0 : index
    %c0_19 = arith.constant 0 : index
    %c0_20 = arith.constant 0 : index
    %33 = vector.load %arg9[%c0_18, %c0_19, %c0_20] : memref<1x8x32xbf16, #tpu.memory_space<vmem>>, vector<1x8x32xbf16>
    %34 = vector.shape_cast %33 : vector<1x8x32xbf16> to vector<8x32xbf16>
    %cst_21 = arith.constant dense<0.000000e+00> : vector<16x32xf32>
    %35 = tpu.matmul %32, %34, %cst_21 {dimension_numbers = #tpu.dot_dimension_numbers<[1], [0], [0], [1], [0, 0, 1, 1], [], []>} : vector<16x8xbf16>, vector<8x32xbf16>, vector<16x32xf32> -> vector<16x32xf32>
    %36 = arith.addf %31, %35 : vector<16x32xf32>
    %c0_22 = arith.constant 0 : index
    %c0_23 = arith.constant 0 : index
    %c0_24 = arith.constant 0 : index
    %37 = vector.load %arg10[%c0_22, %c0_23, %c0_24] : memref<1x16x32xf32, #tpu.memory_space<vmem>>, vector<1x16x32xf32>
    %38 = vector.shape_cast %37 : vector<1x16x32xf32> to vector<16x32xf32>
    %39 = vector.shape_cast %36 : vector<16x32xf32> to vector<1x16x32xf32>
    tpu.vector_store %arg10[%c0_22, %c0_23, %c0_24], %39 {strides = array<i32>} : memref<1x16x32xf32, #tpu.memory_space<vmem>>, vector<1x16x32xf32>,
    return
  }
  func.func @transform_0(%arg0: i32, %arg1: i32, %arg2: i32) -> (i32, i32, i32) {
    %c0_i32 = arith.constant 0 : i32
    %c0_i32_0 = arith.constant 0 : i32
    return %arg0, %arg1, %c0_i32 : i32, i32, i32
  }
  func.func @transform_1(%arg0: i32, %arg1: i32, %arg2: i32) -> (i32, i32, i32) {
    %c0_i32 = arith.constant 0 : i32
    %c0_i32_0 = arith.constant 0 : i32
    %c0_i32_1 = arith.constant 0 : i32
    return %arg0, %c0_i32, %c0_i32_0 : i32, i32, i32
  }
  func.func @transform_2(%arg0: i32, %arg1: i32, %arg2: i32) -> (i32, i32) {
    %c0_i32 = arith.constant 0 : i32
    %c0_i32_0 = arith.constant 0 : i32
    %c0_i32_1 = arith.constant 0 : i32
    return %c0_i32, %c0_i32_0 : i32, i32
  }
  func.func @transform_3(%arg0: i32, %arg1: i32, %arg2: i32) -> (i32, i32, i32) {
    %c0_i32 = arith.constant 0 : i32
    %c0_i32_0 = arith.constant 0 : i32
    %c0_i32_1 = arith.constant 0 : i32
    return %arg2, %c0_i32, %c0_i32_0 : i32, i32, i32
  }
  func.func @transform_4(%arg0: i32, %arg1: i32, %arg2: i32) -> (i32, i32, i32) {
    %c0_i32 = arith.constant 0 : i32
    %c0_i32_0 = arith.constant 0 : i32
    %c0_i32_1 = arith.constant 0 : i32
    return %arg2, %c0_i32, %c0_i32_0 : i32, i32, i32
  }
  func.func @transform_5(%arg0: i32, %arg1: i32, %arg2: i32) -> (i32, i32, i32) {
    %c0_i32 = arith.constant 0 : i32
    %c0_i32_0 = arith.constant 0 : i32
    %c0_i32_1 = arith.constant 0 : i32
    return %arg2, %c0_i32, %c0_i32_0 : i32, i32, i32
  }
  func.func @transform_6(%arg0: i32, %arg1: i32, %arg2: i32) -> (i32, i32, i32) {
    %c0_i32 = arith.constant 0 : i32
    %c0_i32_0 = arith.constant 0 : i32
    %c0_i32_1 = arith.constant 0 : i32
    return %arg2, %c0_i32, %c0_i32_0 : i32, i32, i32
  }
  func.func @transform_7(%arg0: i32, %arg1: i32, %arg2: i32) -> (i32, i32, i32) {
    %c0_i32 = arith.constant 0 : i32
    %c0_i32_0 = arith.constant 0 : i32
    return %arg0, %arg1, %c0_i32 : i32, i32, i32
  }
}

</mosaic_0001>

<bundles_post_ra>
// kernel: tpu_custom_call.1
= control target key start
LH: loop header
LB: loop body
LE: loop exit
PB: predicated region body
PF: predicated region fallthrough
CT: control target
= control target key end

     0   :  { %12 = vsyncpa [#allocation6], 0  ;;  %s1401_s0 = inlined_call_operand.vmem [shape: f32[2,16,32], index: 0, kind: input, shape index: {}]   ;;  %s1402_s1 = inlined_call_operand.vmem [shape: bf16[2,16,32], index: 1, kind: input, shape index: {}]   ;;  %s1403_s2 = inlined_call_operand.vmem [shape: f32[1,32], index: 2, kind: input, shape index: {}]   ;;  %s1404_s3 = inlined_call_operand.vmem [shape: bf16[4,32,8], index: 3, kind: input, shape index: {}]   ;;  %s1405_s4 = inlined_call_operand.vmem [shape: bf16[4,32,8], index: 4, kind: input, shape index: {}]   ;;  %s1406_s5 = inlined_call_operand.vmem [shape: bf16[4,32,8], index: 5, kind: input, shape index: {}]   ;;  %s1407_s6 = inlined_call_operand.vmem [shape: bf16[4,8,32], index: 6, kind: input, shape index: {}]   ;;  %s1408_s7 = inlined_call_operand.hbm [shape: f32[2,16,32], index: 7, kind: output, shape index: {}]  }
   0x1   :  { %14 = vsyncpa [#allocation6 + $0x1], 0  ;;  %s1210_s24 = smov 0   ;;  %s1212_s25 = smov 0  }
   0x2   :  { %s1214_s26 = smov 0   ;;  %s1216_s27 = smov 0  }
   0x3   :  { %s1218_s28 = smov 0   ;;  %s1220_s29 = smov 0  }
   0x4   :  { %s1222_s30 = smov 0   ;;  %s1224_s8 = smov 0  }
   0x5 LB: > { %1418 = sst [smem:[#allocation8_spill]] %s1137_s24  ;;  %s887_s9 = sadd.s32 4294967295, %s1165_s8   ;;  %s1165_s8 = sphi %s1224_s8, %s20_s8   ;;  %s1161_s30 = sphi %s1222_s30, %s1438_s30   ;;  %s1157_s29 = sphi %s1220_s29, %s1437_s29   ;;  %s1153_s28 = sphi %s1218_s28, %s1436_s28   ;;  %s1149_s27 = sphi %s1216_s27, %s1435_s27   ;;  %s1145_s26 = sphi %s1214_s26, %s1434_s26   ;;  %s1141_s25 = sphi %s1212_s25, %s1440_s25   ;;  %s1137_s24 = sphi %s1210_s24, %s1439_s24  }
   0x6   : > { %1419 = sst [smem:[#allocation9_spill]] %s1145_s26  ;;  %s888_s10 = sadd.s32 4294967294, %s1165_s8  }
   0x7   : > { %1420 = sst [smem:[#allocation10_spill]] %s1157_s29  ;;  %s32_s11 = sadd.s32 1, %s1157_s29 }
   0x8   : > { %1421 = sst [smem:[#allocation11_spill]] %s1161_s30  ;;  %p33_p0 = scmp.ge.s32.totalorder %s32_s11, 4 }
   0x9   : > { %1422 = sst [smem:[#allocation12_spill]] %s1165_s8  ;;  %s39_s12 = sadd.s32 1, %s1161_s30 }
   0xa   : > { %p237_p1 = scmp.ne.s32.totalorder %s1145_s26, %s1141_s25  ;;  %p238_p2 = scmp.eq.s32.totalorder %s887_s9, 7 }
   0xb   : > { %s1442_s11 = smov (%p33_p0, %s32_s11), 0  ;;  %s1444_s12 = smov (!%p33_p0, %s39_s12), %s1161_s30 }
   0xc   : > { %1423 = sst [smem:[#allocation13_spill]] %s1442_s11  ;;  %p1259_p3 = por %p238_p2, %p237_p1 }
   0xd   : > { %p243_p4 = scmp.ne.s32.totalorder %s1141_s25, %s1137_s24  ;;  %p41_p5 = scmp.ge.s32.totalorder %s1444_s12, 2 }
   0xe   : > { %p244_p6 = scmp.eq.s32.totalorder %s888_s10, 7  ;;  %p891_p7 = scmp.ge.s32.totalorder %s1165_s8, 1 }
   0xf   : > { %p317_p8 = scmp.lt.s32.totalorder %s1165_s8, 9  ;;  %s1446_s12 = smov (%p41_p5, %s1444_s12), 0 }
  0x10   : > { %1425 = sst [smem:[#allocation14_spill]] %s1446_s12  ;;  %p1269_p9 = por %p244_p6, %p243_p4 }
  0x11   : > { %p318_p10 = pnand %p891_p7, %p317_p8  ;;  %s222_s15 = ssub.s32 %s1161_s30, %s1446_s12 }
  0x12   : > { %s1426_s14 = scalar_select %p1269_p9, 1, 0 }
  0x13   : > { %s227_s16 = sadd.s32 1, %s1145_s26  ;;  %p225_p11 = scmp.eq.s32.totalorder %s222_s15, 0 }
  0x14   : > { %1427 = sst [smem:[#allocation15_spill]] %s1426_s14  ;;  %321 = sbr.rel (%p318_p10) target bundleno = 1026 (0x402), region = 48 }
  0x15   : > { %s1277_s17 = scalar_select %p225_p11, %s1145_s26, %s227_s16  }
  0x16   : > { %s1413_s18 = sand.u32 (!%p318_p10), 1, %s1141_s25   ;;  %p378_p12 = scmp.lt.s32.totalorder (!%p318_p10), %s1153_s28, 1 }
  0x17   : > { %1428 = sst [smem:[#allocation16_spill]] %s1277_s17  ;;  %s892_s19 = sshll.u32 (!%p318_p10), %s1413_s18, 4 }
  0x18   : > { %p392_p13 = scmp.lt.s32.totalorder (!%p318_p10), %s1149_s27, 3  ;;  %p904_p0 = scmp.ne.s32.totalorder (!%p318_p10), %s1149_s27, 0 }
  0x19   : > { %s379_s20 = scalar_select %p378_p12, %s1153_s28, 1 }
  0x1a   : > { %s393_s21 = scalar_select %p392_p13, %s1149_s27, 3 }
  0x1b   : > { %s962_s22 = sshll.u32 %s379_s20, 4  ;;  %s963_s23 = sshll.u32 %s379_s20, 3 }
  0x1c   : > { %s385_s15 = scalar_lea.vmem %s1401_s0, %s962_s22  ;;  %s1292_s11 = scalar_lea.vmem %s1402_s1, %s963_s23 }
  0x1d   : > { %s964_s30 = sshll.u32 %s393_s21, 4  ;;  %s903_s29 = sshll.u32 %s393_s21, 2 }
  0x1e   : > { %s1297_s18 = scalar_lea.vmem %s1404_s3, %s964_s30  ;;  %s1302_s20 = scalar_lea.vmem %s1405_s4, %s964_s30 }
  0x1f   : > { %s1307_s22 = scalar_lea.vmem %s1406_s5, %s964_s30  ;;  %s1312_s10 = scalar_lea.vmem %s1407_s6, %s903_s29 }
  0x20   : > { %s1314_s21 = scalar_lea.vmem [#allocation5], %s892_s19  ;;  %416 = sbr.rel (%p904_p0) target bundleno = 194 (0xc2), region = 52 }
  0x25   : > { %v417_v0 = vld [vmem:[%s385_s15] sm:$0xff]  ;;  %vm421_vm0 = vcmask 261120   ;;  %v418_v2 = vld [vmem:[%s385_s15 + $0x8] sm:$0xff]  ;;  %v1167_v6 = vmov 32.0   ;;  %vm469_vm5 = vcmask 257024  }
  0x26   : > { %v419_v1 = vmul.f32 %v417_v0, %v417_v0  ;;  %472 = vst.msk [vmem:[%s1314_s21] sm:$0xff] %vm421_vm0, %v417_v0  ;;  %v420_v4 = vmul.f32 %v418_v2, %v418_v2  ;;  %1057 = vrcp.f32 %v1167_v6  ;;  %v1056_v27 = vld [vmem:[%s1403_s2] ss:$0 sm:$0xff] }
  0x27   : > { %473 = vst.msk [vmem:[%s1314_s21 + $0x8] sm:$0xff] %vm421_vm0, %v418_v2 }
  0x28   : > { %v422_v3 = vsel %vm421_vm0, %v419_v1, 0.0  ;;  %v425_v5 = vsel %vm421_vm0, %v420_v4, 0.0 }
  0x29   : > { %423 = vadd.xlane.f32.xlu0 %v422_v3 }
  0x2c   : > { %v1058_v7 = vpop.eup %1057 }
  0x2d   : > { %v429_v8 = vmul.f32 32.0, %v1058_v7  ;;  %vm433_vm1 = vweird.f32 %v1058_v7 }
  0x2f   : > { %v430_v9 = vsub.f32 1.0, %v429_v8 }
  0x31   : > { %426 = vadd.xlane.f32.xlu0 %v425_v5  ;;  %v431_v10 = vmul.f32 %v1058_v7, %v430_v9 }
  0x33   : > { %v432_v11 = vadd.f32 %v1058_v7, %v431_v10 }
  0x35   : > { %v434_v12 = vsel %vm433_vm1, %v1058_v7, %v432_v11 }
  0x9c   : > { %v424_v13 = vpop.xlane.xlu0 %423 }
  0x9d   : > { %v435_v14 = vmul.f32 %v434_v12, %v424_v13 }
  0x9f   : > { %v437_v15 = vadd.f32 1e-06, %v435_v14 }
  0xa1   : > { %1059 = vrsqrt.f32 %v437_v15  ;;  %vm445_vm3 = vweird.f32 %v437_v15 }
  0xa4   : > { %v427_v16 = vpop.xlane.xlu0 %426 }
  0xa5   : > { %v436_v17 = vmul.f32 %v434_v12, %v427_v16 }
  0xa7   : > { %v1060_v18 = vpop.eup %1059  ;;  %v438_v19 = vadd.f32 1e-06, %v436_v17 }
  0xa8   : > { %v440_v20 = vmul.f32 %v1060_v18, %v437_v15  ;;  %vm446_vm2 = vweird.f32 %v1060_v18 }
  0xa9   : > { %1061 = vrsqrt.f32 %v438_v19  ;;  %vm447_vm4 = vmor %vm445_vm3, %vm446_vm2  ;;  %vm455_vm7 = vweird.f32 %v438_v19 }
  0xaa   : > { %v441_v21 = vmul.f32 %v1060_v18, %v440_v20 }
  0xac   : > { %v442_v22 = vmul.f32 0.5, %v441_v21 }
  0xae   : > { %v443_v23 = vsub.f32 1.5, %v442_v22 }
  0xaf   : > { %v1062_v24 = vpop.eup %1061 }
  0xb0   : > { %v444_v25 = vmul.f32 %v1060_v18, %v443_v23  ;;  %v450_v26 = vmul.f32 %v1062_v24, %v438_v19  ;;  %vm456_vm6 = vweird.f32 %v1062_v24 }
  0xb1   : > { %vm457_vm8 = vmor %vm455_vm7, %vm456_vm6 }
  0xb2   : > { %v448_v28 = vsel %vm447_vm4, %v1060_v18, %v444_v25  ;;  %v451_v29 = vmul.f32 %v1062_v24, %v450_v26 }
  0xb3   : > { %v459_v30 = vmul.f32 %v448_v28, %v417_v0 }
  0xb4   : > { %v452_v31 = vmul.f32 0.5, %v451_v29 }
  0xb5   : > { %v465_v32 = vmul.f32 %v1056_v27, %v459_v30 }
  0xb6   : > { %v453_v33 = vsub.f32 1.5, %v452_v31 }
  0xb7   : > { %v467_v34 = vpack.c.bf16 %v465_v32, %v465_v32 }
  0xb8   : > { %v454_v35 = vmul.f32 %v1062_v24, %v453_v33 }
  0xb9   : > { %470 = vst.msk [vmem:[#allocation2] sm:$0xf] %vm469_vm5, %v467_v34 }
  0xba   : > { %v458_v36 = vsel %vm457_vm8, %v1062_v24, %v454_v35 }
  0xbb   : > { %v460_v37 = vmul.f32 %v458_v36, %v418_v2 }
  0xbd   : > { %v466_v38 = vmul.f32 %v1056_v27, %v460_v37 }
  0xbf   : > { %v468_v39 = vpack.c.bf16 %v466_v38, %v466_v38 }
  0xc1   : > { %471 = vst.msk [vmem:[#allocation2 + $0x4] sm:$0xf] %vm469_vm5, %v468_v39 }
  0xc2 PF: > { %v969_v40 = vld [vmem:[%s1302_s20 + $0x8] sm:$0xff]  ;;  %v968_v42 = vld [vmem:[%s1302_s20] sm:$0xff]  ;;  %vm501_vm9 = vcmask 261120   ;;  %s970_s29 = sshll.u32 %s1149_s27, 3  ;;  %vm524_vm10 = vcmask 60416   ;;  %vm619_vm11 = vcmask 64512  }
  0xc3   : > { %v980_v41 = vld [vmem:[%s1297_s18 + $0x8] sm:$0xff]  ;;  %511 = vmatpush.bf16.msra.mxu0 %v969_v40  ;;  %v979_v43 = vld [vmem:[%s1297_s18] sm:$0xff]  ;;  %s523_s30 = scalar_lea.vmem [#allocation3], %s970_s29  ;;  %vm640_vm12 = vcmask 130048   ;;  %s560_s8 = scalar_lea.vmem [#allocation4], %s970_s29  ;;  %vm694_vm13 = vcmask 1043456  }
  0xc4   : > { %605 = vmatpush.bf16.msra.mxu2 %v980_v41  ;;  %v967_v44 = vld [vmem:[%s1292_s11] sm:$0xff]  ;;  %v972_v55 = vld [vmem:[%s1307_s22 + $0x8] sm:$0xff]  ;;  %s981_s27 = sshll.u32 %s1153_s28, 4  ;;  %s731_s18 = sshll.u32 %s1314_s21, 4  ;;  %s732_s18 = int_to_ptr.vmem [resolvable:$true] %s731_s18 }
  0xc5   : > { %549 = vmatpush.bf16.msra.mxu1 %v972_v55  ;;  %v971_v56 = vld [vmem:[%s1307_s22] sm:$0xff]  ;;  %v687_v24 = vld [vmem:[%s1314_s21] sm:$0xff]  ;;  %s730_s17 = scalar_lea.hbm %s1408_s7, %s981_s27  ;;  %s1429_s15 = sand.u32 1, %s1141_s25  }
  0xc6   : > { %v690_v12 = vld [vmem:[%s1312_s10] sm:$0xf]  ;;  %s733_s19 = sshll.u32 %s730_s17, 4  ;;  %s717_s28 = scalar_lea.sflag [#allocation6], %s1429_s15  ;;  %s734_s19 = int_to_ptr.hbm [resolvable:$true] %s733_s19 }
  0xc7   : > { %512 = vmatpush.bf16.msra.mxu0 %v968_v42  ;;  %v696_v13 = vsel %vm694_vm13, %v690_v12, 0  ;;  %v688_v27 = vld [vmem:[%s1314_s21 + $0x8] sm:$0xff]  ;;  %s1085_s16 = sshra.s32 %s734_s19, 4  ;;  %s1091_s12 = scalar_lea.hbm %s1408_s7, 32  ;;  %s1086_s16 = int_to_ptr.hbm [resolvable:$true] %s1085_s16 }
  0xc8   : > { %v974_v45 = vld [vmem:[#allocation2] sm:$0xff]  ;;  %606 = vmatpush.bf16.msra.mxu2 %v979_v43  ;;  %s1087_s20 = scalar_lea.hbm %s1086_s16, 16  ;;  %p1092_p5 = scmp.lt.s32.totalorder %s1086_s16, %s1408_s7 }
  0xc9   : > { %550 = vmatpush.bf16.msra.mxu1 %v971_v56  ;;  %p1088_p1 = scmp.ne.s32.totalorder %s1086_s16, %s1087_s20  ;;  %p1093_p6 = scmp.lt.s32.totalorder %s1091_s12, %s1087_s20 }
  0xca   : > { %917 = vmatmul.msk.bf16.vlgmr.msra.gmra.mxu0 %vm501_vm9, %v967_v44 }
  0xcb   : > { %945 = vmatmul.msk.bf16.vlgmr.msra.gmra.mxu2 %vm501_vm9, %v974_v45  ;;  %p1089_p2 = pnand %p1088_p1, %p1259_p3  ;;  %p1094_p7 = por %p1093_p6, %p1092_p5 }
  0xcc   : > { %928 = vmatmul.msk.bf16.vlgmr.msra.gmra.mxu1 %vm501_vm9, %v967_v44 }
  0xcd   : > { %705 = vmatpush.bf16.msrb.mxu1 %v696_v13  ;;  %p1090_p4 = pneg %p1089_p2 }
  0xcf   : > { %p1095_p8 = pnand %p1094_p7, %p1090_p4 }
 0x147   : > { %v514_v46 = vpop.f32.mrf.mxu0 }
 0x148   : > { %v519_v47 = vpack.c.bf16 %v514_v46, %v514_v46 }
 0x149   : > { %v552_v61 = vpop.f32.mrf.mxu1 }
 0x14a   : > { %525 = vst.msk [vmem:[%s523_s30] sm:$0xf] %vm524_vm10, %v519_v47  ;;  %v557_v62 = vpack.c.bf16 %v552_v61, %v552_v61 }
 0x14c   : > { %561 = vst.msk [vmem:[%s560_s8] sm:$0xf] %vm524_vm10, %v557_v62 }
 0x14e   : > { %v608_v50 = vpop.f32.mrf.mxu2 }
 0x14f   : > { %v516_v48 = vpop.f32.mrf.mxu0 }
 0x150   : > { %v520_v49 = vpack.c.bf16 %v516_v48, %v516_v48 }
 0x151   : > { %v554_v2 = vpop.f32.mrf.mxu1 }
 0x152   : > { %526 = vst.msk [vmem:[%s523_s30 + $0x4] sm:$0xf] %vm524_vm10, %v520_v49  ;;  %v558_v3 = vpack.c.bf16 %v554_v2, %v554_v2 }
 0x154   : > { %562 = vst.msk [vmem:[%s560_s8 + $0x4] sm:$0xf] %vm524_vm10, %v558_v3 }
 0x156   : > { %v610_v53 = vpop.f32.mrf.mxu2 }
 0x157   : > { %v613_v54 = vpack.c.bf16 %v610_v53, %v608_v50 }
 0x159   : > { %v976_v51 = vld [vmem:[%s523_s30] sm:$0xff] }
 0x15a   : > { %v624_v52 = vsel %vm619_vm11, %v976_v51, 0 }
 0x15b   : > { %633 = vmatpush.bf16.xpose.msra.mxu3 %v624_v52  ;;  %v978_v9 = vld [vmem:[%s560_s8] sm:$0xff] }
 0x15c   : > { %680 = vmatpush.bf16.msrb.mxu0 %v978_v9 }
 0x162   : > { %950 = vmatmul.msk.bf16.vlgmr.msra.gmra.mxu3 %vm619_vm11, %v613_v54 }
 0x1e5   : > { %v635_v57 = vpop.f32.mrf.mxu3 }
 0x1e6   : > { %v641_v58 = vsel %vm640_vm12, %v635_v57, -inf }
 0x1e7   : > { %642 = vmax.xlane.f32.xlu0 %v641_v58 }
 0x1ed   : > { %v637_v59 = vpop.f32.mrf.mxu3 }
 0x1ee   : > { %v644_v60 = vsel %vm640_vm12, %v637_v59, -inf }
 0x1ef   : > { %645 = vmax.xlane.f32.xlu0 %v644_v60 }
 0x25a   : > { %v643_v63 = vpop.xlane.xlu0 %642 }
 0x25b   : > { %v647_v0 = vsub.f32 %v635_v57, %v643_v63 }
 0x25d   : > { %v649_v1 = vmul.f32 1.442695, %v647_v0 }
 0x25f   : > { %1063 = vpow2.f32 %v649_v1 }
 0x262   : > { %v646_v4 = vpop.xlane.xlu0 %645 }
 0x263   : > { %v648_v5 = vsub.f32 %v637_v59, %v646_v4 }
 0x265   : > { %v1064_v6 = vpop.eup %1063  ;;  %v651_v7 = vmul.f32 1.442695, %v648_v5 }
 0x266   : > { %v653_v8 = vsel %vm640_vm12, %v1064_v6, 0.0 }
 0x267   : > { %1065 = vpow2.f32 %v651_v7  ;;  %654 = vadd.xlane.f32.xlu1 %v653_v8 }
 0x26d   : > { %v1066_v10 = vpop.eup %1065 }
 0x26e   : > { %v656_v11 = vsel %vm640_vm12, %v1066_v10, 0.0 }
 0x26f   : > { %657 = vadd.xlane.f32.xlu1 %v656_v11 }
 0x2da   : > { %v655_v14 = vpop.xlane.xlu1 %654 }
 0x2db   : > { %1067 = vrcp.f32 %v655_v14 }
 0x2e1   : > { %v1068_v16 = vpop.eup %1067 }
 0x2e2   : > { %v658_v15 = vpop.xlane.xlu1 %657  ;;  %v661_v18 = vmul.f32 %v1068_v16, %v1064_v6 }
 0x2e3   : > { %1069 = vrcp.f32 %v658_v15 }
 0x2e9   : > { %v1070_v17 = vpop.eup %1069 }
 0x2ea   : > { %v662_v19 = vmul.f32 %v1070_v17, %v1066_v10 }
 0x2ec   : > { %v663_v20 = vpack.c.bf16 %v662_v19, %v661_v18 }
 0x2ee   : > { %955 = vmatmul.msk.bf16.vlgmr.msrb.gmra.mxu0 %vm640_vm12, %v663_v20 }
 0x36b   : > { %v682_v21 = vpop.f32.mrf.mxu0 }
 0x373   : > { %v684_v22 = vpop.f32.mrf.mxu0 }
 0x374   : > { %v689_v23 = vpack.c.bf16 %v684_v22, %v682_v21 }
 0x376   : > { %956 = vmatmul.msk.bf16.vlgmr.msrb.gmra.mxu1 %vm619_vm11, %v689_v23 }
 0x3f3   : > { %v707_v25 = vpop.f32.mrf.mxu1 }
 0x3f4   : > { %v712_v26 = vadd.f32 %v707_v25, %v687_v24 }
 0x3f6   : > { %714 = vst.msk [vmem:[%s1314_s21] sm:$0xff] %vm501_vm9, %v712_v26 }
 0x3fb   : > { %v709_v28 = vpop.f32.mrf.mxu1 }
 0x3fc   : > { %v713_v29 = vadd.f32 %v709_v28, %v688_v27 }
 0x3fe   : > { %715 = vst.msk [vmem:[%s1314_s21 + $0x8] sm:$0xff] %vm501_vm9, %v713_v29 }
 0x3ff   : > { %1098 = shalt.err (!%p1095_p8)
}
 0x400   : > { %s1168_s21 = smov 128   ;;  %s1169_s24 = smov 8  }
 0x401   : > { %982 = dma.vmem_to_hbm [thread:$0]  (%p1259_p3), %s732_s18, 256, %s734_s19, %s717_s28, %s1168_s21, %s1168_s21, %s1169_s24  }
 0x402 PF: > { %s1430_s26 = sld [smem:[#allocation12_spill]] }
 0x403   : > { %s1431_s29 = sld [smem:[#allocation8_spill]] }
 0x408   : > { %p988_p10 = scmp.ge.s32.totalorder %s1430_s26, 2 }
 0x409   : > { %s748_s8 = sand.u32 1, %s1431_s29  }
 0x40a   : > { %p985_p11 = pnand %p988_p10, %p1269_p9  ;;  %s749_s27 = scalar_lea.sflag [#allocation6], %s748_s8 }
 0x40c   : > { %p986_p12 = pneg %p985_p11 }
 0x40e   : > { %1132 = dma.done.wait (%p986_p12), %s749_s27, 256  }
 0x40f   : > { %1134 = vsyncadd (%p986_p12), %s749_s27, 4294967040  ;;  %s20_s8 = sadd.s32 1, %s1430_s26   ;;  %s1433_s11 = sld [smem:[#allocation9_spill]] }
 0x410   : > { %p17_p13 = scmp.ge.s32.totalorder %s20_s8, 10   ;;  %s1434_s26 = sld [smem:[#allocation16_spill]] }
 0x411   : > { %s1435_s27 = sld [smem:[#allocation10_spill]]  ;;  %s1439_s24 = smov %s1141_s25 }
 0x412   : > { %s1436_s28 = sld [smem:[#allocation11_spill]]  ;;  %19 = sbr.rel (!%p17_p13) target bundleno = 5 (0x5), region = 110 }
 0x413   : > { %s1437_s29 = sld [smem:[#allocation13_spill]] }
 0x414   : > { %s1438_s30 = sld [smem:[#allocation14_spill]] }
 0x415   : > { %s1440_s25 = smov %s1433_s11 }
 0x417   :  { %755 = vsyncpa [#allocation6], 1 }
 0x418   :  { %757 = vsyncpa [#allocation6 + $0x1], 1 }

</bundles_post_ra>
